<compile_context>
chip_gen: v6e
topology: v6e:2x2x1
jax: 0.10.0
libtpu: 0.0.40
codegen_flags: <defaults>
</compile_context>

<pallas_src>
from typing import Any, Optional

import jax
import jax.numpy as jnp
from jax.experimental import pallas as pl
from jax.experimental.pallas import tpu as pltpu


# ----------------------------------------------------------------------------
# Pallas kernel: zero rows of one (layer, env-tile) slab where done == True.
#   done_ref : (TN, 1) int32 tile of the env mask (1 = finished)
#   mem_ref  : (TN, H) memory slab — layer dim squeezed via BlockSpec
#   out_ref  : (TN, H) in-place aliased output slab
# ----------------------------------------------------------------------------
def _reset_memory_kernel(done_ref, mem_ref, out_ref):
    keep = done_ref[...] == 0                        # (TN, 1) bool, broadcasts over lanes
    out_ref[...] = jnp.where(keep, mem_ref[...], jnp.zeros_like(mem_ref))


def _choose_env_tile(num_envs: int, hidden: int, itemsize: int,
                     vmem_budget_bytes: int = 8 * 1024 * 1024) -> int:
    """Pick an env-axis tile so double-buffered (in + out) tiles stay well under
    the scoped-VMEM limit on every generation (v5e 16 MiB, v6e 32 MiB, v7x 64 MiB
    physical). 2 pipeline buffers x (input tile + output tile) per grid step."""
    bytes_per_env_row = max(hidden * itemsize, 1)
    tn = vmem_budget_bytes // (4 * bytes_per_env_row)
    tn = int(max(8, min(num_envs, tn)))
    if tn < num_envs:
        tn = max(8, (tn // 8) * 8)                   # keep (8, 128) sublane alignment
    return tn


def reset_memory_pallas(memory: jax.Array, done: jax.Array) -> jax.Array:
    """Functional equivalent of `memory[..., done, :] = 0` (in-place aliased output)."""
    L, N, H = memory.shape

    if done.dtype == jnp.bool_:
        if done.ndim > 1 and done.shape[-1] == 1:
            done = jnp.squeeze(done, axis=-1)        # mirrors done.squeeze(-1)
        done_mask = done
    else:
        # integer env indices -> boolean mask over the env axis
        done_mask = jnp.zeros((N,), dtype=jnp.bool_).at[done.reshape(-1)].set(True)
    done_i32 = done_mask.astype(jnp.int32).reshape(N, 1)

    tn = _choose_env_tile(N, H, memory.dtype.itemsize)
    # Env tiles on the outer grid axis so the tiny mask tile (index_map ignores l)
    # stays resident across the inner layer loop.
    grid = (pl.cdiv(N, tn), L)

    # TODO(synk): when H is not a multiple of 128 the stores are masked (vst.msk);
    # a lane-dense repack of (N, H) in the wrapper would help very small hidden sizes.
    # TODO(synk): a scalar-prefetched sparse variant (grid over compacted done
    # indices + manual DMA) would cut HBM traffic ~10-100x when few envs finish;
    # the dense tiled in-place version is kept for robustness.
    return pl.pallas_call(
        _reset_memory_kernel,
        out_shape=jax.ShapeDtypeStruct((L, N, H), memory.dtype),
        grid=grid,
        in_specs=[
            pl.BlockSpec((tn, 1), lambda n, l: (n, 0)),           # env mask tile (reused over l)
            pl.BlockSpec((None, tn, H), lambda n, l: (l, n, 0)),  # squeezed layer dim -> (tn, H)
        ],
        out_specs=pl.BlockSpec((None, tn, H), lambda n, l: (l, n, 0)),
        input_output_aliases={1: 0},   # update memory in place (matches PyTorch mutation)
        compiler_params=pltpu.CompilerParams(
            dimension_semantics=("parallel", "parallel"),
        ),
    )(done_i32, memory)


# Below this element count the pallas_call launch/pipeline overhead dominates;
# a fused XLA `where` is strictly faster on all generations.
_PALLAS_MIN_ELEMENTS = 1 << 16


def _reset_memory_xla(memory: jax.Array, done: jax.Array) -> jax.Array:
    N = memory.shape[-2]
    if done.dtype == jnp.bool_:
        if done.ndim > 1 and done.shape[-1] == 1:
            done = jnp.squeeze(done, axis=-1)
        mask = done
    else:
        mask = jnp.zeros((N,), dtype=jnp.bool_).at[done.reshape(-1)].set(True)
    return jnp.where(mask[..., None], jnp.zeros_like(memory), memory)


# ----------------------------------------------------------------------------
# JAX-side mirror of cusrl.module.Module (bookkeeping only; no parameters).
# ----------------------------------------------------------------------------
class Module:
    input_dim: int
    output_dim: int
    is_recurrent: bool
    is_distributed: bool
    intermediate_repr: dict[str, Any]

    def __init__(
        self,
        input_dim: Optional[int] = None,
        output_dim: Optional[int] = None,
        is_recurrent: bool = False,
        like: Optional["Module"] = None,
        intermediate_repr: Optional[dict[str, Any]] = None,
    ):
        if like is not None:
            input_dim = like.input_dim
            output_dim = like.output_dim
            is_recurrent = like.is_recurrent
        else:
            if input_dim is None or output_dim is None:
                raise ValueError(
                    "'input_dim' and 'output_dim' should be specified if 'like' is not provided."
                )
            if input_dim <= 0:
                raise ValueError("'input_dim' should be positive integers.")
            if output_dim <= 0:
                raise ValueError("'output_dim' should be a positive integer.")
        self.input_dim = input_dim
        self.output_dim = output_dim
        self.is_recurrent = is_recurrent
        self.is_distributed = False
        self.intermediate_repr = {} if intermediate_repr is None else intermediate_repr
        self._rnn_compatible = False

    # TODO(synk): base-class forward raises NotImplementedError in PyTorch;
    # there is no compute to translate for it.
    def forward(self, *args, **kwargs):
        raise NotImplementedError

    def __call__(self, *args, **kwargs):
        return self.forward(*args, **kwargs)

    def step_memory(self, input, memory=None, **kwargs):
        _, *memory = self(input, memory=memory, **kwargs)
        if not memory:
            return None
        return memory[0]

    def reset_memory(self, memory, done=None):
        """Zero the memory of finished environments (Pallas hot path for large states)."""
        if memory is None:
            return None
        if isinstance(memory, tuple):
            return tuple(self.reset_memory(mem, done) for mem in memory)
        if done is None:
            # PyTorch `memory[..., None, :] = 0` zeroes the entire tensor.
            return jnp.zeros_like(memory)
        if memory.size < _PALLAS_MIN_ELEMENTS:
            return _reset_memory_xla(memory, done)
        return reset_memory_pallas(memory, done)

    def clear_intermediate_repr(self):
        self.intermediate_repr.clear()
        return self

    def rnn_compatible(self):
        if not self.is_recurrent and not self._rnn_compatible:
            self._rnn_compatible = True
            original_forward = self.forward

            def wrapped_forward(input, **kwargs):
                output = original_forward(input)
                if "memory" in kwargs:
                    return (output, kwargs["memory"])
                return output

            self.forward = wrapped_forward
        return self


# ----------------------------------------------------------------------------
# Demo / correctness check
# ----------------------------------------------------------------------------
if __name__ == "__main__":
    key = jax.random.PRNGKey(0)
    k_mem, k_done = jax.random.split(key)

    num_layers, num_envs, hidden = 2, 8, 32
    memory = jax.random.normal(k_mem, (num_layers, num_envs, hidden), dtype=jnp.float32)
    done = jax.random.bernoulli(k_done, p=0.5, shape=(num_envs, 1))   # bool, (N, 1)

    # Reference (computed before the aliased call): memory[..., done.squeeze(-1), :] = 0
    done_flat = jnp.squeeze(done, axis=-1)
    ref = jnp.where(done_flat[None, :, None], 0.0, memory)

    # 1) Exercise the Pallas kernel directly at small deterministic shapes.
    out = jax.block_until_ready(reset_memory_pallas(memory, done))
    assert out.shape == memory.shape and out.dtype == memory.dtype
    assert bool(jnp.allclose(out, ref)), "Pallas reset_memory mismatch vs reference"

    # 2) Module-level dispatch paths (small -> fused XLA, tuple memory, done=None).
    module = Module(input_dim=16, output_dim=hidden, is_recurrent=True)
    out_small = jax.block_until_ready(module.reset_memory(memory, done))
    assert bool(jnp.allclose(out_small, ref))
    out_tuple = module.reset_memory((memory, memory), done)
    assert isinstance(out_tuple, tuple) and bool(jnp.allclose(out_tuple[0], ref))
    out_none = module.reset_memory(memory, None)
    assert bool(jnp.allclose(out_none, jnp.zeros_like(memory)))

    print("KERNEL_OK")
</pallas_src>

<mosaic_0001>
module attributes {stable_mosaic.version = 11 : i64} {
  func.func @_reset_memory_kernel(%arg0: i32, %arg1: i32, %arg2: memref<8x1xi32, #tpu.memory_space<vmem>>, %arg3: memref<1x8x32xf32, #tpu.memory_space<vmem>>, %arg4: memref<1x8x32xf32, #tpu.memory_space<vmem>>) attributes {dimension_semantics = [#tpu.dimension_semantics<parallel>, #tpu.dimension_semantics<parallel>], iteration_bounds = array<i64: 1, 2>, scalar_prefetch = 0 : i64, scratch_operands = 0 : i64, tpu.core_type = #tpu.core_type<tc>, window_params = [{transform_indices = @transform_0, window_bounds = array<i64: 8, 1>}, {transform_indices = @transform_1, window_bounds = array<i64: 1, 8, 32>}, {transform_indices = @transform_2, window_bounds = array<i64: 1, 8, 32>}]} {
    %c0 = arith.constant 0 : index
    %c0_0 = arith.constant 0 : index
    %0 = vector.load %arg2[%c0, %c0_0] : memref<8x1xi32, #tpu.memory_space<vmem>>, vector<8x1xi32>
    %c0_i32 = arith.constant 0 : i32
    %1 = vector.broadcast %c0_i32 : i32 to vector<8x1xi32>
    %2 = arith.cmpi eq, %0, %1 : vector<8x1xi32>
    %c0_1 = arith.constant 0 : index
    %c0_2 = arith.constant 0 : index
    %c0_3 = arith.constant 0 : index
    %3 = vector.load %arg3[%c0_1, %c0_2, %c0_3] : memref<1x8x32xf32, #tpu.memory_space<vmem>>, vector<1x8x32xf32>
    %4 = vector.shape_cast %3 : vector<1x8x32xf32> to vector<8x32xf32>
    %cst = arith.constant 0.000000e+00 : f32
    %5 = vector.broadcast %cst : f32 to vector<8x32xf32>
    %6 = vector.shape_cast %2 : vector<8x1xi1> to vector<8x1xi1>
    %7 = vector.broadcast %6 : vector<8x1xi1> to vector<8x32xi1>
    %8 = arith.select %7, %4, %5 : vector<8x32xi1>, vector<8x32xf32>
    %c0_4 = arith.constant 0 : index
    %c0_5 = arith.constant 0 : index
    %c0_6 = arith.constant 0 : index
    %9 = vector.load %arg4[%c0_4, %c0_5, %c0_6] : memref<1x8x32xf32, #tpu.memory_space<vmem>>, vector<1x8x32xf32>
    %10 = vector.shape_cast %9 : vector<1x8x32xf32> to vector<8x32xf32>
    %11 = vector.shape_cast %8 : vector<8x32xf32> to vector<1x8x32xf32>
    tpu.vector_store %arg4[%c0_4, %c0_5, %c0_6], %11 {strides = array<i32>} : memref<1x8x32xf32, #tpu.memory_space<vmem>>, vector<1x8x32xf32>,
    return
  }
  func.func @transform_0(%arg0: i32, %arg1: i32) -> (i32, i32) {
    %c0_i32 = arith.constant 0 : i32
    %c0_i32_0 = arith.constant 0 : i32
    return %arg0, %c0_i32 : i32, i32
  }
  func.func @transform_1(%arg0: i32, %arg1: i32) -> (i32, i32, i32) {
    %c0_i32 = arith.constant 0 : i32
    %c0_i32_0 = arith.constant 0 : i32
    return %arg1, %arg0, %c0_i32 : i32, i32, i32
  }
  func.func @transform_2(%arg0: i32, %arg1: i32) -> (i32, i32, i32) {
    %c0_i32 = arith.constant 0 : i32
    %c0_i32_0 = arith.constant 0 : i32
    return %arg1, %arg0, %c0_i32 : i32, i32, i32
  }
}

</mosaic_0001>

<bundles_post_ra>
// kernel: tpu_custom_call.1
= control target key start
LH: loop header
LB: loop body
LE: loop exit
PB: predicated region body
PF: predicated region fallthrough
CT: control target
= control target key end

     0   :  { %7 = vsyncpa [#allocation3], 0  ;;  %s663_s0 = inlined_call_operand.vmem [shape: s32[8,1], index: 0, kind: input, shape index: {}]   ;;  %s664_s1 = inlined_call_operand.hbm [shape: f32[2,8,32], index: 1, kind: input, shape index: {}, may-alias: {1,2}]   ;;  %s665_s2 = inlined_call_operand.hbm [shape: f32[2,8,32], index: 2, kind: output, shape index: {}, may-alias: {1,2}]  }
   0x1   :  { %9 = vsyncpa [#allocation3 + $0x1], 0 }
   0x2   :  { %10 = vsyncpa [#allocation4], 0 }
   0x3   :  { %12 = vsyncpa [#allocation4 + $0x1], 0  ;;  %s520_s9 = smov 0   ;;  %s522_s10 = smov 0  }
   0x4   :  { %s524_s11 = smov 0   ;;  %s526_s12 = smov 0  }
   0x5   :  { %s528_s13 = smov 0   ;;  %s530_s14 = smov 0  }
   0x6 LB: > { %s314_s15 = sadd.s32 4294967295, %s500_s14   ;;  %s315_s16 = sadd.s32 4294967294, %s500_s14   ;;  %s500_s14 = sphi %s530_s14, %s18_s14   ;;  %s496_s13 = sphi %s528_s13, %s677_s13   ;;  %s492_s12 = sphi %s526_s12, %s676_s12   ;;  %s488_s11 = sphi %s524_s11, %s675_s11   ;;  %s484_s10 = sphi %s522_s10, %s674_s10   ;;  %s480_s9 = sphi %s520_s9, %s673_s9  }
   0x7   : > { %s27_s17 = sadd.s32 1, %s496_s13  ;;  %s65_s18 = sadd.s32 1, %s488_s11 }
   0x8   : > { %p28_p0 = scmp.ge.s32.totalorder %s27_s17, 2  ;;  %p72_p1 = scmp.ne.s32.totalorder %s488_s11, %s484_s10 }
   0x9   : > { %p73_p2 = scmp.eq.s32.totalorder %s500_s14, 0  ;;  %p78_p3 = scmp.ne.s32.totalorder %s484_s10, %s480_s9 }
   0xa   : > { %s679_s17 = smov (%p28_p0, %s27_s17), 0  ;;  %p79_p5 = scmp.eq.s32.totalorder %s314_s15, 0 }
   0xb   : > { %p561_p4 = por %p73_p2, %p72_p1  ;;  %s60_s20 = ssub.s32 %s496_s13, %s679_s17 }
   0xc   : > { %p104_p6 = scmp.eq.s32.totalorder %s314_s15, 1  ;;  %p63_p7 = scmp.eq.s32.totalorder %s60_s20, 0 }
   0xd   : > { %p567_p8 = por %p79_p5, %p78_p3  ;;  %p110_p10 = scmp.eq.s32.totalorder %s315_s16, 1 }
   0xe   : > { %p571_p9 = por %p104_p6, %p72_p1  ;;  %p340_p13 = scmp.lt.s32.totalorder %s500_s14, 2 }
   0xf   : > { %s576_s23 = scalar_select %p63_p7, %s488_s11, %s65_s18  }
  0x10   : > { %p578_p11 = por %p110_p10, %p78_p3  ;;  %s137_s25 = sand.u32 1, %s488_s11  }
  0x11   : > { %s319_s26 = sshll.u32 %s137_s25, 3  ;;  %s320_s27 = sshll.u32 %s496_s13, 7 }
  0x12   : > { %s669_s24 = scalar_select %p578_p11, 1, 0 }
  0x13   : > { %s147_s30 = scalar_lea.hbm %s664_s1, %s320_s27  ;;  %s141_s3 = scalar_lea.vmem [#allocation2], %s319_s26 }
  0x14   : > { %s149_s4 = sshll.u32 %s141_s3, 4  ;;  %p591_p0 = pnand %p340_p13, %p561_p4  ;;  %s150_s4 = int_to_ptr.vmem [resolvable:$true] %s149_s4 }
  0x15   : > { %p321_p1 = scmp.ge.s32.totalorder %s500_s14, 1  ;;  %p154_p2 = scmp.lt.s32.totalorder %s500_s14, 3 }
  0x16   : > { %s138_s6 = scalar_lea.sflag [#allocation3], %s137_s25  ;;  %p394_p3 = pneg %p591_p0 }
  0x17   : > { %s405_s7 = scalar_lea.vmem %s150_s4, 128  ;;  %s502_s8 = smov [#allocation2]  }
  0x18   : > { %p406_p5 = scmp.ne.s32.totalorder %s150_s4, %s405_s7  ;;  %s410_s15 = sshll.u32 %s502_s8, 4  ;;  %s411_s15 = int_to_ptr.vmem [resolvable:$false] %s410_s15 }
  0x19   : > { %s412_s16 = scalar_lea.vmem %s411_s15, 256  ;;  %p413_p10 = scmp.lt.s32.totalorder %s150_s4, %s411_s15 }
  0x1a   : > { %p408_p6 = pnand %p406_p5, %p394_p3  ;;  %p414_p12 = scmp.lt.s32.totalorder %s412_s16, %s405_s7 }
  0x1c   : > { %p409_p7 = pneg %p408_p6  ;;  %p415_p4 = por %p414_p12, %p413_p10 }
  0x1e   : > { %p416_p13 = pnand %p415_p4, %p409_p7 }
  0x20   : > { %419 = shalt.err (!%p416_p13)
}
  0x21   : > { %335 = dma.hbm_to_vmem [thread:$0]  (!%p591_p0), %s147_s30, 128, %s150_s4, %s138_s6  }
  0x22   : > { %p155_p11 = pnand %p321_p1, %p154_p2 }
  0x23   : > { %s606_s18 = sand.u32 (!%p155_p11), 1, %s484_s10  }
  0x24   : > { %158 = sbr.rel (%p155_p11) target bundleno = 184 (0xb8), region = 28  ;;  %s322_s19 = sshll.u32 (!%p155_p11), %s606_s18, 3 }
  0x25   : > { %s161_s20 = scalar_lea.sflag (!%p155_p11), [#allocation3], %s606_s18  ;;  %s164_s25 = scalar_lea.vmem (!%p155_p11), [#allocation2], %s322_s19 }
  0x29   : > { %471 = dma.done.wait (%p567_p8), %s161_s20, 128  }
  0x2a   : > { %473 = vsyncadd (%p567_p8), %s161_s20, 4294967168  ;;  %v503_v0 = vmov 0   ;;  %v193_v1 = vld [vmem:[%s663_s0] sm:$0xff]  ;;  %s325_s28 = sshll.u32 %s492_s12, 7  ;;  %s188_s29 = scalar_lea.vmem [#allocation5], %s322_s19  ;;  %vm202_vm1 = vcmask 261120  }
  0x2b   : > { %391 = vset.pattern.permute.xlu0 %v503_v0  ;;  %vm194_vm0 = vcmp.eq.s32.totalorder %v193_v1, 0  ;;  %s219_s30 = sshll.u32 %s188_s29, 4  ;;  %v195_v3 = vld [vmem:[%s164_s25] sm:$0xff]  ;;  %s621_s4 = scalar_lea.hbm %s665_s2, %s325_s28  ;;  %s220_s30 = int_to_ptr.vmem [resolvable:$true] %s219_s30 }
  0x2c   : > { %v196_v2 = vsel %vm194_vm0, 1, %v503_v0  ;;  %s205_s5 = scalar_lea.sflag [#allocation4], %s606_s18  ;;  %s420_s6 = scalar_lea.vmem %s220_s30, 128 }
  0x2d   : > { %198 = vperm.xlu0 %391, %v196_v2   ;;  %p421_p8 = scmp.ne.s32.totalorder %s220_s30, %s420_s6  ;;  %s504_s12 = smov [#allocation5]  }
  0x2e   : > { %s424_s7 = sshll.u32 %s504_s12, 4  ;;  %s425_s7 = int_to_ptr.vmem [resolvable:$false] %s424_s7 }
  0x2f   : > { %p422_p11 = pnand %p421_p8, %p571_p9  ;;  %s426_s8 = scalar_lea.vmem %s425_s7, 256 }
  0x30   : > { %p427_p0 = scmp.lt.s32.totalorder %s220_s30, %s425_s7  ;;  %p428_p1 = scmp.lt.s32.totalorder %s426_s8, %s420_s6 }
  0x31   : > { %p423_p12 = pneg %p422_p11 }
  0x32   : > { %p429_p2 = por %p428_p1, %p427_p0 }
  0x34   : > { %p430_p3 = pnand %p429_p2, %p423_p12 }
  0xa8   : > { %v199_v4 = vpop.permute.xlu0 %198 }
  0xa9   : > { %vm200_vm2 = vcmp.eq.s32.totalorder %v199_v4, 1 }
  0xaa   : > { %v201_v5 = vsel %vm200_vm2, %v195_v3, 0.0 }
  0xab   : > { %203 = vst.msk [vmem:[%s188_s29] sm:$0xff] %vm202_vm1, %v201_v5 }
  0xac   : > { %433 = shalt.err (!%p430_p3)
}
  0xad   : > { %s434_s15 = scalar_lea.hbm %s621_s4, 128  ;;  %s438_s19 = scalar_lea.hbm %s665_s2, 256 }
  0xae   : > { %p435_p5 = scmp.ne.s32.totalorder %s621_s4, %s434_s15  ;;  %p439_p10 = scmp.lt.s32.totalorder %s621_s4, %s665_s2 }
  0xaf   : > { %p440_p4 = scmp.lt.s32.totalorder %s438_s19, %s434_s15 }
  0xb0   : > { %p436_p6 = pnand %p435_p5, %p571_p9 }
  0xb1   : > { %p441_p13 = por %p440_p4, %p439_p10 }
  0xb2   : > { %p437_p7 = pneg %p436_p6 }
  0xb4   : > { %p442_p8 = pnand %p441_p13, %p437_p7 }
  0xb6   : > { %445 = shalt.err (!%p442_p8)
}
  0xb7   : > { %330 = dma.vmem_to_hbm [thread:$0]  (%p571_p9), %s220_s30, 128, %s621_s4, %s205_s5  }
  0xb8 PF: > { %s231_s26 = sand.u32 1, %s480_s9   ;;  %p671_p11 = scmp.ne.s32.totalorder %s669_s24, 0 }
  0xb9   : > { %p672_p12 = scmp.ge.s32.totalorder %s500_s14, 2  ;;  %s232_s27 = scalar_lea.sflag [#allocation4], %s231_s26 }
  0xbb   : > { %p337_p0 = pnand %p672_p12, %p671_p11 }
  0xbd   : > { %p338_p1 = pneg %p337_p0 }
  0xbf   : > { %475 = dma.done.wait (%p338_p1), %s232_s27, 128  }
  0xc0   : > { %477 = vsyncadd (%p338_p1), %s232_s27, 4294967168  ;;  %s18_s14 = sadd.s32 1, %s500_s14   ;;  %s673_s9 = smov %s484_s10 }
  0xc1   : > { %p15_p2 = scmp.ge.s32.totalorder %s18_s14, 4   ;;  %s674_s10 = smov %s488_s11 }
  0xc2   : > { %s675_s11 = smov %s576_s23  ;;  %s676_s12 = smov %s496_s13 }
  0xc3   : > { %s677_s13 = smov %s679_s17  ;;  %17 = sbr.rel (!%p15_p2) target bundleno = 6 (0x6), region = 76 }
  0xc8   :  { %237 = vsyncpa [#allocation3], 1 }
  0xc9   :  { %239 = vsyncpa [#allocation3 + $0x1], 1 }
  0xca   :  { %240 = vsyncpa [#allocation4], 1 }
  0xcb   :  { %242 = vsyncpa [#allocation4 + $0x1], 1 }

</bundles_post_ra>
